<compile_context>
chip_gen: v7x
topology: tpu7x:2x2x1
jax: 0.10.0
libtpu: 0.0.40
codegen_flags: <defaults>
</compile_context>

<pallas_src>
import functools

import jax
import jax.numpy as jnp
from jax.experimental import pallas as pl
from jax.experimental.pallas import tpu as pltpu

# ---- synthetic cfg values (small, consistent with the module) ----
CLASSES_NUM = 5
FEATURE_MAPS_NUM = 16
KERNAL_LENGTH = 3
POOLING_OUT = 4
WORD_EMBEDDING_DIM = 32


# ---------------------------------------------------------------------------
# Fused kernel: conv1(+ReLU) -> vectorized ROI max pool -> cls/bbox heads
# ---------------------------------------------------------------------------
def _rcnn_fused_kernel(ridx_ref, lo_ref, hi_ref, xf_ref,
                       wconv_ref, bconv_ref, w1_ref, b1_ref, w2_ref, b2_ref,
                       out_ref, *, B, Lp, L_out):
    KH = wconv_ref.shape[0]
    F = wconv_ref.shape[2]
    N = out_ref.shape[0]

    # ---- conv1 taps: KH matmuls over the batch-flattened input --------------
    # xf is (B*Lp, D) with Lp % 8 == 0, so batch lives on sublanes for free.
    xf = xf_ref[...]                                        # (B*Lp, D) f32
    taps = [jnp.dot(xf, wconv_ref[kh], preferred_element_type=jnp.float32)
            for kh in range(KH)]                            # KH x (B*Lp, F)
    bias = bconv_ref[...]                                   # (1, F)

    # ---- vectorized ROI mask (one (N, L_out, F) compare, no per-ROI loop) ---
    col = jax.lax.broadcasted_iota(jnp.int32, (N, L_out, F), 1)
    lo = lo_ref[...]                                        # (N, 1, 1)
    hi = hi_ref[...]                                        # (N, 1, 1)
    ridx = ridx_ref[...]                                    # (N, 1)
    in_roi = (col >= lo) & (col < hi)                       # (N, L_out, F)

    # ---- per-batch conv assembly + masked max pool, select by ridx ----------
    # 0.0 fill is exact: conv output is post-ReLU (>= 0).
    pooled = jnp.zeros((N, F), jnp.float32)
    for b in range(B):                                      # B is tiny & static
        base = b * Lp
        conv_b = taps[0][base:base + L_out, :]
        for kh in range(1, KH):
            conv_b = conv_b + taps[kh][base + kh:base + kh + L_out, :]
        conv_b = jnp.maximum(conv_b + bias, 0.0)            # (L_out, F)
        masked = jnp.where(in_roi, conv_b[None, :, :], 0.0)  # (N, L_out, F)
        pooled_b = jnp.max(masked, axis=1)                  # (N, F)
        pooled = jnp.where(ridx == b, pooled_b, pooled)

    # ---- heads: fused lane-dense fc1 + block-diagonal fc2, single store -----
    h = jnp.dot(pooled, w1_ref[...],
                preferred_element_type=jnp.float32) + b1_ref[...]    # (N, 2H)
    out_ref[...] = (jnp.dot(h, w2_ref[...],
                            preferred_element_type=jnp.float32)
                    + b2_ref[...])                                   # (N, 3*C1)


# ---------------------------------------------------------------------------
# One-time weight preparation (hoisted out of the per-call path)
# ---------------------------------------------------------------------------
def prepare_params(params):
    F, P, KH = FEATURE_MAPS_NUM, POOLING_OUT, KERNAL_LENGTH
    H = F * P
    C1 = CLASSES_NUM + 1

    # conv: one (D, F) tap per kernel row
    w_taps = jnp.transpose(params['conv_w'][:, 0, :, :], (1, 2, 0)).astype(jnp.float32)
    b_conv = params['conv_b'].reshape(1, F).astype(jnp.float32)

    # Fold the P-way pooled replication (x_flat = repeat(pooled, P, axis=1))
    # into the first-layer weights: x_flat @ W.T == pooled @ (W.T).reshape(F,P,H).sum(1)
    w1c = params['cls_fc1_w'].T.reshape(F, P, H).sum(axis=1)          # (F, H)
    w1b = params['bbox_fc1_w'].T.reshape(F, P, H).sum(axis=1)         # (F, H)
    w1_all = jnp.concatenate([w1c, w1b], axis=1).astype(jnp.float32)  # (F, 2H)=(16,128)
    b1_all = jnp.concatenate([params['cls_fc1_b'],
                              params['bbox_fc1_b']]).reshape(1, 2 * H).astype(jnp.float32)

    # Second layers as one block-diagonal matmul -> single (N, 3*C1) store.
    w2_big = jnp.zeros((2 * H, 3 * C1), jnp.float32)
    w2_big = w2_big.at[:H, :C1].set(params['cls_score_w'].T)
    w2_big = w2_big.at[H:, C1:].set(params['bbox_w'].T)
    b2_all = jnp.concatenate([params['cls_score_b'],
                              params['bbox_b']]).reshape(1, 3 * C1).astype(jnp.float32)

    prepared = dict(w_taps=w_taps, b_conv=b_conv,
                    w1=w1_all, b1=b1_all, w2=w2_big, b2=b2_all)
    return jax.tree_util.tree_map(jax.device_put, prepared)


# ---------------------------------------------------------------------------
# Forward wrapper: only pad/reshape glue + the single fused pallas_call
# ---------------------------------------------------------------------------
@jax.jit
def rcnn_forward(prepared, sentence, rois, ridx):
    B, _, L, D = sentence.shape
    KH, F, P = KERNAL_LENGTH, FEATURE_MAPS_NUM, POOLING_OUT
    H = F * P
    C1 = CLASSES_NUM + 1
    N = rois.shape[0]

    L_out = L + 2 - KH + 1                 # conv output length (pad=(1,0))
    Lp = ((L + 2 + 7) // 8) * 8            # sublane-aligned padded length

    # Conv padding + sublane alignment in ONE tiny pad; flatten batch into
    # sublanes so the kernel does KH matmuls of shape (B*Lp, D)@(D, F).
    x = sentence[:, 0].astype(jnp.float32)                    # (B, L, D)
    xp = jnp.pad(x, ((0, 0), (1, Lp - L - 1), (0, 0)))        # (B, Lp, D)
    xflat = xp.reshape(B * Lp, D)                             # (B*Lp, D)

    ridx_c = ridx.astype(jnp.int32).reshape(N, 1)
    lo = rois[:, 0].astype(jnp.int32).reshape(N, 1, 1)        # left boundary
    hi = (rois[:, 1].astype(jnp.int32) + 1).reshape(N, 1, 1)  # right (exclusive)

    kernel = functools.partial(_rcnn_fused_kernel, B=B, Lp=Lp, L_out=L_out)

    out = pl.pallas_call(
        kernel,
        out_shape=jax.ShapeDtypeStruct((N, 3 * C1), jnp.float32),
        grid=(1,),
        in_specs=[
            pl.BlockSpec((N, 1), lambda i: (0, 0)),                # ridx
            pl.BlockSpec((N, 1, 1), lambda i: (0, 0, 0)),          # lo
            pl.BlockSpec((N, 1, 1), lambda i: (0, 0, 0)),          # hi
            pl.BlockSpec((B * Lp, D), lambda i: (0, 0)),           # flattened input
            pl.BlockSpec((KH, D, F), lambda i: (0, 0, 0)),         # conv taps
            pl.BlockSpec((1, F), lambda i: (0, 0)),                # conv bias
            pl.BlockSpec((F, 2 * H), lambda i: (0, 0)),            # fused fc1 weights
            pl.BlockSpec((1, 2 * H), lambda i: (0, 0)),            # fused fc1 bias
            pl.BlockSpec((2 * H, 3 * C1), lambda i: (0, 0)),       # block-diag fc2
            pl.BlockSpec((1, 3 * C1), lambda i: (0, 0)),           # fused fc2 bias
        ],
        out_specs=pl.BlockSpec((N, 3 * C1), lambda i: (0, 0)),
        compiler_params=pltpu.CompilerParams(
            dimension_semantics=("arbitrary",)),
    )(ridx_c, lo, hi, xflat, prepared['w_taps'], prepared['b_conv'],
      prepared['w1'], prepared['b1'], prepared['w2'], prepared['b2'])

    cls = out[:, :C1]
    bbox = out[:, C1:].reshape(-1, C1, 2)
    return cls, bbox


# ---------------------------------------------------------------------------
# Pure-JAX reference (mirrors the PyTorch forward exactly; eval mode, so the
# training-only dropout branch is inactive)
# ---------------------------------------------------------------------------
def rcnn_reference(params, sentence, rois, ridx):
    hp = jax.lax.Precision.HIGHEST
    conv = jax.lax.conv_general_dilated(
        sentence.astype(jnp.float32), params['conv_w'],
        window_strides=(1, 1), padding=((1, 1), (0, 0)),
        dimension_numbers=('NCHW', 'OIHW', 'NCHW'), precision=hp)
    conv = jnp.maximum(conv + params['conv_b'].reshape(1, -1, 1, 1), 0.0)  # (B,F,L_out,1)
    pooled = []
    for i in range(rois.shape[0]):
        x1 = int(rois[i, 0]); x2 = int(rois[i, 1]) + 1
        sl = conv[int(ridx[i]), :, x1:x2, 0]                  # (F, h)
        pooled.append(jnp.max(sl, axis=1))
    pooled = jnp.stack(pooled, axis=0)                        # (N, F)
    x_flat = jnp.repeat(pooled, POOLING_OUT, axis=1)
    h = jnp.dot(x_flat, params['cls_fc1_w'].T, precision=hp) + params['cls_fc1_b']
    cls = jnp.dot(h, params['cls_score_w'].T, precision=hp) + params['cls_score_b']
    hb = jnp.dot(x_flat, params['bbox_fc1_w'].T, precision=hp) + params['bbox_fc1_b']
    box = jnp.dot(hb, params['bbox_w'].T, precision=hp) + params['bbox_b']
    return cls, box.reshape(-1, CLASSES_NUM + 1, 2)


if __name__ == "__main__":
    key = jax.random.PRNGKey(0)
    ks = jax.random.split(key, 12)
    B, L, D = 2, 16, WORD_EMBEDDING_DIM
    F, KH, P = FEATURE_MAPS_NUM, KERNAL_LENGTH, POOLING_OUT
    H = F * P
    C1 = CLASSES_NUM + 1

    params = {
        'conv_w':      0.1 * jax.random.normal(ks[0], (F, 1, KH, D), jnp.float32),
        'conv_b':      0.1 * jax.random.normal(ks[1], (F,), jnp.float32),
        'cls_fc1_w':   0.1 * jax.random.normal(ks[2], (H, H), jnp.float32),
        'cls_fc1_b':   0.1 * jax.random.normal(ks[3], (H,), jnp.float32),
        'cls_score_w': 0.1 * jax.random.normal(ks[4], (C1, H), jnp.float32),
        'cls_score_b': 0.1 * jax.random.normal(ks[5], (C1,), jnp.float32),
        'bbox_fc1_w':  0.1 * jax.random.normal(ks[6], (H, H), jnp.float32),
        'bbox_fc1_b':  0.1 * jax.random.normal(ks[7], (H,), jnp.float32),
        'bbox_w':      0.1 * jax.random.normal(ks[8], (2 * C1, H), jnp.float32),
        'bbox_b':      0.1 * jax.random.normal(ks[9], (2 * C1,), jnp.float32),
    }

    sentence = jax.random.normal(ks[10], (B, 1, L, D), jnp.float32)
    rois = jnp.array([[0, 3], [2, 7], [5, 15], [1, 1], [8, 12]], dtype=jnp.int32)
    ridx = jnp.array([0, 1, 0, 1, 1], dtype=jnp.int32)

    prepared = prepare_params(params)            # one-time weight prep (hoisted)
    cls, bbox = rcnn_forward(prepared, sentence, rois, ridx)
    (cls, bbox) = jax.block_until_ready((cls, bbox))

    cls_ref, bbox_ref = rcnn_reference(params, sentence, rois, ridx)
    assert cls.shape == (rois.shape[0], C1)
    assert bbox.shape == (rois.shape[0], C1, 2)
    # Tolerance leaves headroom for MXU f32 pass behavior across TPU
    # generations while still catching any indexing / weight-fold bug
    # (those produce O(0.1+) errors at these scales).
    assert jnp.allclose(cls, cls_ref, atol=2e-2, rtol=2e-2)
    assert jnp.allclose(bbox, bbox_ref, atol=2e-2, rtol=2e-2)
    print("KERNEL_OK")
</pallas_src>

<mosaic_0001>
module attributes {stable_mosaic.version = 11 : i64} {
  func.func @_rcnn_fused_kernel(%arg0: i32, %arg1: memref<5x1xi32, #tpu.memory_space<vmem>>, %arg2: memref<5x1x1xi32, #tpu.memory_space<vmem>>, %arg3: memref<5x1x1xi32, #tpu.memory_space<vmem>>, %arg4: memref<48x32xf32, #tpu.memory_space<vmem>>, %arg5: memref<3x32x16xf32, #tpu.memory_space<vmem>>, %arg6: memref<1x16xf32, #tpu.memory_space<vmem>>, %arg7: memref<16x128xf32, #tpu.memory_space<vmem>>, %arg8: memref<1x128xf32, #tpu.memory_space<vmem>>, %arg9: memref<128x18xf32, #tpu.memory_space<vmem>>, %arg10: memref<1x18xf32, #tpu.memory_space<vmem>>, %arg11: memref<5x18xf32, #tpu.memory_space<vmem>>) attributes {dimension_semantics = [#tpu.dimension_semantics<arbitrary>], iteration_bounds = array<i64: 1>, scalar_prefetch = 0 : i64, scratch_operands = 0 : i64, tpu.core_type = #tpu.core_type<tc>, window_params = [{pipeline_mode = #tpu.pipeline_mode<synchronous>, transform_indices = @transform_0, window_bounds = array<i64: 5, 1>}, {pipeline_mode = #tpu.pipeline_mode<synchronous>, transform_indices = @transform_1, window_bounds = array<i64: 5, 1, 1>}, {pipeline_mode = #tpu.pipeline_mode<synchronous>, transform_indices = @transform_2, window_bounds = array<i64: 5, 1, 1>}, {pipeline_mode = #tpu.pipeline_mode<synchronous>, transform_indices = @transform_3, window_bounds = array<i64: 48, 32>}, {pipeline_mode = #tpu.pipeline_mode<synchronous>, transform_indices = @transform_4, window_bounds = array<i64: 3, 32, 16>}, {pipeline_mode = #tpu.pipeline_mode<synchronous>, transform_indices = @transform_5, window_bounds = array<i64: 1, 16>}, {pipeline_mode = #tpu.pipeline_mode<synchronous>, transform_indices = @transform_6, window_bounds = array<i64: 16, 128>}, {pipeline_mode = #tpu.pipeline_mode<synchronous>, transform_indices = @transform_7, window_bounds = array<i64: 1, 128>}, {pipeline_mode = #tpu.pipeline_mode<synchronous>, transform_indices = @transform_8, window_bounds = array<i64: 128, 18>}, {pipeline_mode = #tpu.pipeline_mode<synchronous>, transform_indices = @transform_9, window_bounds = array<i64: 1, 18>}, {pipeline_mode = #tpu.pipeline_mode<synchronous>, transform_indices = @transform_10, window_bounds = array<i64: 5, 18>}]} {
    %c0 = arith.constant 0 : index
    %c0_0 = arith.constant 0 : index
    %0 = vector.load %arg4[%c0, %c0_0] : memref<48x32xf32, #tpu.memory_space<vmem>>, vector<48x32xf32>
    %c0_1 = arith.constant 0 : index
    %c0_2 = arith.constant 0 : index
    %c0_3 = arith.constant 0 : index
    %1 = vector.load %arg5[%c0_1, %c0_2, %c0_3] : memref<3x32x16xf32, #tpu.memory_space<vmem>>, vector<1x32x16xf32>
    %2 = vector.shape_cast %1 : vector<1x32x16xf32> to vector<32x16xf32>
    %cst = arith.constant dense<0.000000e+00> : vector<48x16xf32>
    %3 = tpu.matmul %0, %2, %cst {dimension_numbers = #tpu.dot_dimension_numbers<[1], [0], [0], [1], [0, 0, 1, 1], [], []>} : vector<48x32xf32>, vector<32x16xf32>, vector<48x16xf32> -> vector<48x16xf32>
    %c1 = arith.constant 1 : index
    %c0_4 = arith.constant 0 : index
    %c0_5 = arith.constant 0 : index
    %4 = vector.load %arg5[%c1, %c0_4, %c0_5] : memref<3x32x16xf32, #tpu.memory_space<vmem>>, vector<1x32x16xf32>
    %5 = vector.shape_cast %4 : vector<1x32x16xf32> to vector<32x16xf32>
    %cst_6 = arith.constant dense<0.000000e+00> : vector<48x16xf32>
    %6 = tpu.matmul %0, %5, %cst_6 {dimension_numbers = #tpu.dot_dimension_numbers<[1], [0], [0], [1], [0, 0, 1, 1], [], []>} : vector<48x32xf32>, vector<32x16xf32>, vector<48x16xf32> -> vector<48x16xf32>
    %c2 = arith.constant 2 : index
    %c0_7 = arith.constant 0 : index
    %c0_8 = arith.constant 0 : index
    %7 = vector.load %arg5[%c2, %c0_7, %c0_8] : memref<3x32x16xf32, #tpu.memory_space<vmem>>, vector<1x32x16xf32>
    %8 = vector.shape_cast %7 : vector<1x32x16xf32> to vector<32x16xf32>
    %cst_9 = arith.constant dense<0.000000e+00> : vector<48x16xf32>
    %9 = tpu.matmul %0, %8, %cst_9 {dimension_numbers = #tpu.dot_dimension_numbers<[1], [0], [0], [1], [0, 0, 1, 1], [], []>} : vector<48x32xf32>, vector<32x16xf32>, vector<48x16xf32> -> vector<48x16xf32>
    %c0_10 = arith.constant 0 : index
    %c0_11 = arith.constant 0 : index
    %10 = vector.load %arg6[%c0_10, %c0_11] : memref<1x16xf32, #tpu.memory_space<vmem>>, vector<1x16xf32>
    %11 = tpu.iota {dimensions = array<i32: 1>} : vector<5x16x16xi32>
    %c0_12 = arith.constant 0 : index
    %c0_13 = arith.constant 0 : index
    %c0_14 = arith.constant 0 : index
    %12 = vector.load %arg2[%c0_12, %c0_13, %c0_14] : memref<5x1x1xi32, #tpu.memory_space<vmem>>, vector<5x1x1xi32>
    %c0_15 = arith.constant 0 : index
    %c0_16 = arith.constant 0 : index
    %c0_17 = arith.constant 0 : index
    %13 = vector.load %arg3[%c0_15, %c0_16, %c0_17] : memref<5x1x1xi32, #tpu.memory_space<vmem>>, vector<5x1x1xi32>
    %c0_18 = arith.constant 0 : index
    %c0_19 = arith.constant 0 : index
    %14 = vector.load %arg1[%c0_18, %c0_19] : memref<5x1xi32, #tpu.memory_space<vmem>>, vector<5x1xi32>
    %15 = vector.broadcast %12 : vector<5x1x1xi32> to vector<5x16x16xi32>
    %16 = arith.cmpi sge, %11, %15 : vector<5x16x16xi32>
    %17 = vector.broadcast %13 : vector<5x1x1xi32> to vector<5x16x16xi32>
    %18 = arith.cmpi slt, %11, %17 : vector<5x16x16xi32>
    %19 = arith.andi %16, %18 : vector<5x16x16xi1>
    %cst_20 = arith.constant 0.000000e+00 : f32
    %20 = vector.broadcast %cst_20 : f32 to vector<5x16xf32>
    %21 = vector.extract_strided_slice %3 {offsets = [0, 0], sizes = [16, 16], strides = [1, 1]} : vector<48x16xf32> to vector<16x16xf32>
    %22 = vector.extract_strided_slice %6 {offsets = [1, 0], sizes = [16, 16], strides = [1, 1]} : vector<48x16xf32> to vector<16x16xf32>
    %23 = arith.addf %21, %22 : vector<16x16xf32>
    %24 = vector.extract_strided_slice %9 {offsets = [2, 0], sizes = [16, 16], strides = [1, 1]} : vector<48x16xf32> to vector<16x16xf32>
    %25 = arith.addf %23, %24 : vector<16x16xf32>
    %26 = vector.broadcast %10 : vector<1x16xf32> to vector<16x16xf32>
    %27 = arith.addf %25, %26 : vector<16x16xf32>
    %cst_21 = arith.constant 0.000000e+00 : f32
    %28 = vector.broadcast %cst_21 : f32 to vector<16x16xf32>
    %29 = arith.maximumf %27, %28 : vector<16x16xf32>
    %30 = vector.shape_cast %29 : vector<16x16xf32> to vector<1x16x16xf32>
    %cst_22 = arith.constant 0.000000e+00 : f32
    %31 = vector.shape_cast %30 : vector<1x16x16xf32> to vector<1x16x16xf32>
    %32 = vector.broadcast %31 : vector<1x16x16xf32> to vector<5x16x16xf32>
    %33 = vector.broadcast %cst_22 : f32 to vector<5x16x16xf32>
    %34 = arith.select %19, %32, %33 : vector<5x16x16xi1>, vector<5x16x16xf32>
    %cst_23 = arith.constant dense<0xFF800000> : vector<5x16xf32>
    %35 = vector.multi_reduction <maximumf>, %34, %cst_23 [1] : vector<5x16x16xf32> to vector<5x16xf32>
    %c0_i32 = arith.constant 0 : i32
    %36 = vector.broadcast %c0_i32 : i32 to vector<5x1xi32>
    %37 = arith.cmpi eq, %14, %36 : vector<5x1xi32>
    %38 = vector.shape_cast %37 : vector<5x1xi1> to vector<5x1xi1>
    %39 = vector.broadcast %38 : vector<5x1xi1> to vector<5x16xi1>
    %40 = arith.select %39, %35, %20 : vector<5x16xi1>, vector<5x16xf32>
    %41 = vector.extract_strided_slice %3 {offsets = [24, 0], sizes = [16, 16], strides = [1, 1]} : vector<48x16xf32> to vector<16x16xf32>
    %42 = vector.extract_strided_slice %6 {offsets = [25, 0], sizes = [16, 16], strides = [1, 1]} : vector<48x16xf32> to vector<16x16xf32>
    %43 = arith.addf %41, %42 : vector<16x16xf32>
    %44 = vector.extract_strided_slice %9 {offsets = [26, 0], sizes = [16, 16], strides = [1, 1]} : vector<48x16xf32> to vector<16x16xf32>
    %45 = arith.addf %43, %44 : vector<16x16xf32>
    %46 = vector.broadcast %10 : vector<1x16xf32> to vector<16x16xf32>
    %47 = arith.addf %45, %46 : vector<16x16xf32>
    %cst_24 = arith.constant 0.000000e+00 : f32
    %48 = vector.broadcast %cst_24 : f32 to vector<16x16xf32>
    %49 = arith.maximumf %47, %48 : vector<16x16xf32>
    %50 = vector.shape_cast %49 : vector<16x16xf32> to vector<1x16x16xf32>
    %cst_25 = arith.constant 0.000000e+00 : f32
    %51 = vector.shape_cast %50 : vector<1x16x16xf32> to vector<1x16x16xf32>
    %52 = vector.broadcast %51 : vector<1x16x16xf32> to vector<5x16x16xf32>
    %53 = vector.broadcast %cst_25 : f32 to vector<5x16x16xf32>
    %54 = arith.select %19, %52, %53 : vector<5x16x16xi1>, vector<5x16x16xf32>
    %cst_26 = arith.constant dense<0xFF800000> : vector<5x16xf32>
    %55 = vector.multi_reduction <maximumf>, %54, %cst_26 [1] : vector<5x16x16xf32> to vector<5x16xf32>
    %c1_i32 = arith.constant 1 : i32
    %56 = vector.broadcast %c1_i32 : i32 to vector<5x1xi32>
    %57 = arith.cmpi eq, %14, %56 : vector<5x1xi32>
    %58 = vector.shape_cast %57 : vector<5x1xi1> to vector<5x1xi1>
    %59 = vector.broadcast %58 : vector<5x1xi1> to vector<5x16xi1>
    %60 = arith.select %59, %55, %40 : vector<5x16xi1>, vector<5x16xf32>
    %c0_27 = arith.constant 0 : index
    %c0_28 = arith.constant 0 : index
    %61 = vector.load %arg7[%c0_27, %c0_28] : memref<16x128xf32, #tpu.memory_space<vmem>>, vector<16x128xf32>
    %cst_29 = arith.constant dense<0.000000e+00> : vector<5x128xf32>
    %62 = tpu.matmul %60, %61, %cst_29 {dimension_numbers = #tpu.dot_dimension_numbers<[1], [0], [0], [1], [0, 0, 1, 1], [], []>} : vector<5x16xf32>, vector<16x128xf32>, vector<5x128xf32> -> vector<5x128xf32>
    %c0_30 = arith.constant 0 : index
    %c0_31 = arith.constant 0 : index
    %63 = vector.load %arg8[%c0_30, %c0_31] : memref<1x128xf32, #tpu.memory_space<vmem>>, vector<1x128xf32>
    %64 = vector.broadcast %63 : vector<1x128xf32> to vector<5x128xf32>
    %65 = arith.addf %62, %64 : vector<5x128xf32>
    %c0_32 = arith.constant 0 : index
    %c0_33 = arith.constant 0 : index
    %66 = vector.load %arg9[%c0_32, %c0_33] : memref<128x18xf32, #tpu.memory_space<vmem>>, vector<128x18xf32>
    %cst_34 = arith.constant dense<0.000000e+00> : vector<5x18xf32>
    %67 = tpu.matmul %65, %66, %cst_34 {dimension_numbers = #tpu.dot_dimension_numbers<[1], [0], [0], [1], [0, 0, 1, 1], [], []>} : vector<5x128xf32>, vector<128x18xf32>, vector<5x18xf32> -> vector<5x18xf32>
    %c0_35 = arith.constant 0 : index
    %c0_36 = arith.constant 0 : index
    %68 = vector.load %arg10[%c0_35, %c0_36] : memref<1x18xf32, #tpu.memory_space<vmem>>, vector<1x18xf32>
    %69 = vector.broadcast %68 : vector<1x18xf32> to vector<5x18xf32>
    %70 = arith.addf %67, %69 : vector<5x18xf32>
    %c0_37 = arith.constant 0 : index
    %c0_38 = arith.constant 0 : index
    %71 = vector.load %arg11[%c0_37, %c0_38] : memref<5x18xf32, #tpu.memory_space<vmem>>, vector<5x18xf32>
    tpu.vector_store %arg11[%c0_37, %c0_38], %70 {strides = array<i32>} : memref<5x18xf32, #tpu.memory_space<vmem>>, vector<5x18xf32>,
    return
  }
  func.func @transform_0(%arg0: i32) -> (i32, i32) {
    %c0_i32 = arith.constant 0 : i32
    %c0_i32_0 = arith.constant 0 : i32
    %c0_i32_1 = arith.constant 0 : i32
    return %c0_i32, %c0_i32_0 : i32, i32
  }
  func.func @transform_1(%arg0: i32) -> (i32, i32, i32) {
    %c0_i32 = arith.constant 0 : i32
    %c0_i32_0 = arith.constant 0 : i32
    %c0_i32_1 = arith.constant 0 : i32
    %c0_i32_2 = arith.constant 0 : i32
    return %c0_i32, %c0_i32_0, %c0_i32_1 : i32, i32, i32
  }
  func.func @transform_2(%arg0: i32) -> (i32, i32, i32) {
    %c0_i32 = arith.constant 0 : i32
    %c0_i32_0 = arith.constant 0 : i32
    %c0_i32_1 = arith.constant 0 : i32
    %c0_i32_2 = arith.constant 0 : i32
    return %c0_i32, %c0_i32_0, %c0_i32_1 : i32, i32, i32
  }
  func.func @transform_3(%arg0: i32) -> (i32, i32) {
    %c0_i32 = arith.constant 0 : i32
    %c0_i32_0 = arith.constant 0 : i32
    %c0_i32_1 = arith.constant 0 : i32
    return %c0_i32, %c0_i32_0 : i32, i32
  }
  func.func @transform_4(%arg0: i32) -> (i32, i32, i32) {
    %c0_i32 = arith.constant 0 : i32
    %c0_i32_0 = arith.constant 0 : i32
    %c0_i32_1 = arith.constant 0 : i32
    %c0_i32_2 = arith.constant 0 : i32
    return %c0_i32, %c0_i32_0, %c0_i32_1 : i32, i32, i32
  }
  func.func @transform_5(%arg0: i32) -> (i32, i32) {
    %c0_i32 = arith.constant 0 : i32
    %c0_i32_0 = arith.constant 0 : i32
    %c0_i32_1 = arith.constant 0 : i32
    return %c0_i32, %c0_i32_0 : i32, i32
  }
  func.func @transform_6(%arg0: i32) -> (i32, i32) {
    %c0_i32 = arith.constant 0 : i32
    %c0_i32_0 = arith.constant 0 : i32
    %c0_i32_1 = arith.constant 0 : i32
    return %c0_i32, %c0_i32_0 : i32, i32
  }
  func.func @transform_7(%arg0: i32) -> (i32, i32) {
    %c0_i32 = arith.constant 0 : i32
    %c0_i32_0 = arith.constant 0 : i32
    %c0_i32_1 = arith.constant 0 : i32
    return %c0_i32, %c0_i32_0 : i32, i32
  }
  func.func @transform_8(%arg0: i32) -> (i32, i32) {
    %c0_i32 = arith.constant 0 : i32
    %c0_i32_0 = arith.constant 0 : i32
    %c0_i32_1 = arith.constant 0 : i32
    return %c0_i32, %c0_i32_0 : i32, i32
  }
  func.func @transform_9(%arg0: i32) -> (i32, i32) {
    %c0_i32 = arith.constant 0 : i32
    %c0_i32_0 = arith.constant 0 : i32
    %c0_i32_1 = arith.constant 0 : i32
    return %c0_i32, %c0_i32_0 : i32, i32
  }
  func.func @transform_10(%arg0: i32) -> (i32, i32) {
    %c0_i32 = arith.constant 0 : i32
    %c0_i32_0 = arith.constant 0 : i32
    %c0_i32_1 = arith.constant 0 : i32
    return %c0_i32, %c0_i32_0 : i32, i32
  }
}

</mosaic_0001>

<bundles_post_ra>
// kernel: rcnn_forward.1
= control target key start
LH: loop header
LB: loop body
LE: loop exit
PB: predicated region body
PF: predicated region fallthrough
CT: control target
= control target key end

     0   :  { %vm45_vm0 = vcmask 261120   ;;  %v1106_v3 = vmov 0   ;;  %v1107_v38 = vmov 0.0|0.0   ;;  %vm1108_vm3 = vmmov 0   ;;  %s1578_s4 = inlined_call_operand.vmem [shape: f32[3,32,16], index: 4, kind: input, shape index: {}]   ;;  %s1579_s3 = inlined_call_operand.vmem [shape: f32[48,32], index: 3, kind: input, shape index: {}]   ;;  %s1580_s2 = inlined_call_operand.vmem [shape: s32[5,1,1], index: 2, kind: input, shape index: {}]   ;;  %s1581_s1 = inlined_call_operand.vmem [shape: s32[5,1,1], index: 1, kind: input, shape index: {}]   ;;  %s1582_s0 = inlined_call_operand.vmem [shape: s32[5,1], index: 0, kind: input, shape index: {}]   ;;  %s1583_s6 = inlined_call_operand.vmem [shape: f32[16,128], index: 6, kind: input, shape index: {}]   ;;  %s1584_s8 = inlined_call_operand.vmem [shape: f32[128,18], index: 8, kind: input, shape index: {}]   ;;  %s1585_s5 = inlined_call_operand.vmem [shape: f32[1,16], index: 5, kind: input, shape index: {}]   ;;  %s1586_s7 = inlined_call_operand.vmem [shape: f32[1,128], index: 7, kind: input, shape index: {}]   ;;  %s1587_s9 = inlined_call_operand.vmem [shape: f32[1,18], index: 9, kind: input, shape index: {}]   ;;  %s1588_s10 = inlined_call_operand.vmem [shape: f32[5,18], index: 10, kind: output, shape index: {}]  }
   0x1   :  { %v41_v0 = vld [vmem:[%s1578_s4] sm:$0xff]  ;;  %v42_v1 = vld [vmem:[%s1578_s4 + $0x8] sm:$0xff]  ;;  %v43_v2 = vld [vmem:[%s1578_s4 + $0x10] sm:$0xff]  ;;  %1105 = vset.pattern.permute.xlu1 %v1106_v3  ;;  %1104 = vset.pattern.permute.xlu0 %v1106_v3  ;;  %v1109_v41 = vmov 0.0   ;;  %vm488_vm4 = vcmask 1045504   ;;  %vm475_vm5 = vcmask 1046528  }
   0x2   :  { %v1049_v4 = vpack.c.bf16 %v42_v1, %v41_v0  ;;  %v44_v5 = vld [vmem:[%s1578_s4 + $0x18] sm:$0xff]  ;;  %v35_v6 = vld [vmem:[%s1579_s3] sm:$0xff]  ;;  %v873_v9 = vld [vmem:[%s1578_s4 + $0x28] sm:$0xff] }
   0x3   :  { %v1053_v7 = vpack.c.bf16 %v44_v5, %v43_v2  ;;  %964 = vmatprep.mubr.msk.f32.mxu1 %vm45_vm0, %v35_v6  ;;  %v872_v8 = vld [vmem:[%s1578_s4 + $0x20] sm:$0xff]  ;;  %998 = vmatprep.mubr.msk.f32.mxu0 %vm45_vm0, %v35_v6  ;;  %v883_v11 = vld [vmem:[%s1578_s4 + $0x48] sm:$0xff]  ;;  %v884_v13 = vld [vmem:[%s1578_s4 + $0x50] sm:$0xff] }
   0x4   :  { %v882_v10 = vld [vmem:[%s1578_s4 + $0x40] sm:$0xff]  ;;  %1050 = vmatprep.subr.bf16.mxu1 %v1049_v4  ;;  %v1057_v14 = vpack.c.bf16 %v873_v9, %v872_v8  ;;  %v874_v15 = vld [vmem:[%s1578_s4 + $0x30] sm:$0xff]  ;;  %v885_v16 = vld [vmem:[%s1578_s4 + $0x58] sm:$0xff] }
   0x5   :  { %1052 = vmatpush3.bf16.msra.mxu1 %v1049_v4  ;;  %v1065_v12 = vpack.c.bf16 %v883_v11, %v882_v10  ;;  %v875_v17 = vld [vmem:[%s1578_s4 + $0x38] sm:$0xff]  ;;  %v1069_v18 = vpack.c.bf16 %v885_v16, %v884_v13  ;;  %v897_v19 = vld [vmem:[%s1580_s2] ss:$0 sm:$0xff]  ;;  %v36_v21 = vld [vmem:[%s1579_s3 + $0x8] sm:$0xff] }
   0x6   :  { %1054 = vmatprep.subr.bf16.mxu1 %v1053_v7  ;;  %v892_v20 = vld [vmem:[%s1581_s1] ss:$0 sm:$0xff]  ;;  %438 = vperm.xlu1 %1105, %v897_v19   ;;  %v37_v22 = vld [vmem:[%s1579_s3 + $0x10] sm:$0xff]  ;;  %v1061_v23 = vpack.c.bf16 %v875_v17, %v874_v15  ;;  %v898_v24 = vld [vmem:[%s1580_s2 + $0x1] ss:$0 sm:$0xff] }
   0x7   :  { %1066 = vmatprep.subr.bf16.mxu0 %v1065_v12  ;;  %393 = vperm.xlu0 %1104, %v892_v20   ;;  %v893_v25 = vld [vmem:[%s1581_s1 + $0x1] ss:$0 sm:$0xff]  ;;  %v38_v26 = vld [vmem:[%s1579_s3 + $0x18] sm:$0xff]  ;;  %v899_v28 = vld [vmem:[%s1580_s2 + $0x2] ss:$0 sm:$0xff] }
   0x8   :  { %1068 = vmatpush3.bf16.msra.mxu0 %v1065_v12  ;;  %v39_v27 = vld [vmem:[%s1579_s3 + $0x20] sm:$0xff]  ;;  %v40_v30 = vld [vmem:[%s1579_s3 + $0x28] sm:$0xff]  ;;  %v769_v45 = vld [vmem:[%s1584_s8 + $0x10] sm:$0xff]  ;;  %v358_v12 = vlaneseq }
   0x9   :  { %1056 = vmatpush3.bf16.msra.mxu1 %v1053_v7  ;;  %1070 = vmatprep.subr.bf16.mxu0 %v1069_v18  ;;  %v894_v29 = vld [vmem:[%s1581_s1 + $0x2] ss:$0 sm:$0xff]  ;;  %v900_v31 = vld [vmem:[%s1580_s2 + $0x3] ss:$0 sm:$0xff]  ;;  %v901_v34 = vld [vmem:[%s1580_s2 + $0x4] ss:$0 sm:$0xff] }
   0xa   :  { %1058 = vmatprep.subr.bf16.mxu1 %v1057_v14  ;;  %441 = vperm.xlu1 %1105, %v898_v24   ;;  %v895_v32 = vld [vmem:[%s1581_s1 + $0x3] ss:$0 sm:$0xff]  ;;  %v896_v35 = vld [vmem:[%s1581_s1 + $0x4] ss:$0 sm:$0xff]  ;;  %v686_v40 = vld [vmem:[%s1583_s6 + $0x8] sm:$0xff] }
   0xb   :  { %396 = vperm.xlu0 %1104, %v893_v25   ;;  %v371_v33 = vld [vmem:[%s1582_s0] sm:$0x1f]  ;;  %v768_v44 = vld [vmem:[%s1584_s8 + $0x8] sm:$0xff]  ;;  %v770_v47 = vld [vmem:[%s1584_s8 + $0x18] sm:$0xff] }
   0xc   :  { %965 = vmatmul.mubr.msk.f32.vlgmr.msra.gmra.mrb[0].mxu1 %vm45_vm0, %v36_v21  ;;  %1072 = vmatpush3.bf16.msra.mxu0 %v1069_v18  ;;  %vm668_vm1 = vcmp.eq.s32.totalorder %v371_v33, 1  ;;  %vm564_vm2 = vcmp.eq.s32.totalorder %v371_v33, 0  ;;  %v685_v39 = vld [vmem:[%s1583_s6] sm:$0xff]  ;;  %v1080_v48 = vpack.c.bf16 %v770_v47, %v769_v45  ;;  %v772_v50 = vld [vmem:[%s1584_s8 + $0x28] sm:$0xff]  ;;  %v773_v52 = vld [vmem:[%s1584_s8 + $0x30] sm:$0xff] }
   0xd   :  { %1060 = vmatpush3.bf16.msra.mxu1 %v1057_v14  ;;  %967 = vmatprep.mubr.msk.f32.mxu1 %vm45_vm0, %v37_v22  ;;  %v669_v36 = vsel %vm668_vm1, 1, %v1106_v3  ;;  %v565_v37 = vsel %vm564_vm2, 1, %v1106_v3  ;;  %v1074_v42 = vpack.c.bf16 %v686_v40, %v685_v39  ;;  %v767_v43 = vld [vmem:[%s1584_s8] sm:$0xff]  ;;  %v774_v53 = vld [vmem:[%s1584_s8 + $0x38] sm:$0xff]  ;;  %v776_v56 = vld [vmem:[%s1584_s8 + $0x48] sm:$0xff] }
   0xe   :  { %1062 = vmatprep.subr.bf16.mxu1 %v1061_v23  ;;  %444 = vperm.xlu1 %1105, %v899_v28   ;;  %v1077_v46 = vpack.c.bf16 %v768_v44, %v767_v43  ;;  %v771_v49 = vld [vmem:[%s1584_s8 + $0x20] sm:$0xff]  ;;  %v1086_v54 = vpack.c.bf16 %v774_v53, %v773_v52  ;;  %v777_v58 = vld [vmem:[%s1584_s8 + $0x50] sm:$0xff]  ;;  %v778_v59 = vld [vmem:[%s1584_s8 + $0x58] sm:$0xff] }
   0xf   :  { %999 = vmatmul.mubr.msk.f32.vlgmr.msra.gmra.mrb[0].mxu0 %vm45_vm0, %v36_v21  ;;  %399 = vperm.xlu0 %1104, %v894_v29   ;;  %v1083_v51 = vpack.c.bf16 %v772_v50, %v771_v49  ;;  %v775_v55 = vld [vmem:[%s1584_s8 + $0x40] sm:$0xff]  ;;  %v1092_v60 = vpack.c.bf16 %v778_v59, %v777_v58  ;;  %v780_v62 = vld [vmem:[%s1584_s8 + $0x68] sm:$0xff] }
  0x10   :  { %968 = vmatmul.mubr.msk.f32.gmra.mrb[2].mxu1 %vm45_vm0, %v38_v26  ;;  %1001 = vmatprep.mubr.msk.f32.mxu0 %vm45_vm0, %v37_v22  ;;  %v1089_v57 = vpack.c.bf16 %v776_v56, %v775_v55  ;;  %v779_v61 = vld [vmem:[%s1584_s8 + $0x60] sm:$0xff] }
  0x11   :  { %970 = vmatprep.mubr.msk.f32.mxu1 %vm45_vm0, %v39_v27  ;;  %1064 = vmatpush3.bf16.msra.mxu1 %v1061_v23  ;;  %v1095_v63 = vpack.c.bf16 %v780_v62, %v779_v61 }
  0x12   :  { %447 = vperm.xlu1 %1105, %v900_v31   ;;  %1073 = vmatprep.subr.bf16.mxu1 %v1107_v38 }
  0x13   :  { %1002 = vmatmul.mubr.msk.f32.gmra.mrb[2].mxu0 %vm45_vm0, %v38_v26  ;;  %402 = vperm.xlu0 %1104, %v895_v32  }
  0x14   :  { %971 = vmatmul.mubr.msk.f32.gmra.mrb[4].mxu1 %vm45_vm0, %v40_v30  ;;  %1004 = vmatprep.mubr.msk.f32.mxu0 %vm45_vm0, %v39_v27 }
  0x15   :  { %981 = vmatprep.mubr.msk.f32.mxu1 %vm45_vm0, %v35_v6  ;;  %1076 = vmatprep.subr.bf16.mxu0 %v1107_v38 }
  0x16   :  { %450 = vperm.xlu1 %1105, %v901_v34   ;;  %1078 = vmatpush3.bf16.msra.mxu0 %v1077_v46 }
  0x17   :  { %1005 = vmatmul.mubr.msk.f32.gmra.mrb[4].mxu0 %vm45_vm0, %v40_v30  ;;  %405 = vperm.xlu0 %1104, %v896_v35  }
  0x18   :  { %982 = vmatmul.mubr.msk.f32.vlgmr.msra.gmra.mrb[6].mxu1 %vm45_vm0, %v36_v21  ;;  %1046 = vmatprep.mubr.msk.f32.mxu0 %vm1108_vm3, %v1109_v41  ;;  %v1341_v21 = vshrl.u32 %v358_v12, 7 }
  0x19   :  { %984 = vmatprep.mubr.msk.f32.mxu1 %vm45_vm0, %v37_v22  ;;  %1075 = vmatpush3.bf16.msra.mxu1 %v1074_v42 }
  0x1a   :  { %671 = vperm.xlu1 %1105, %v669_v36   ;;  %1079 = vmatprep.subr.bf16.mxu0 %v1107_v38  ;;  %v1347_v32 = vadd.s32 8, %v1341_v21 }
  0x1b   :  { %567 = vperm.xlu0 %1104, %v565_v37   ;;  %1081 = vmatpush3.bf16.msra.mxu0 %v1080_v48 }
  0x1c   :  { %985 = vmatmul.mubr.msk.f32.gmra.mrb[8].mxu1 %vm45_vm0, %v38_v26  ;;  %1082 = vmatprep.subr.bf16.mxu0 %v1107_v38 }
  0x1d   :  { %987 = vmatprep.mubr.msk.f32.mxu1 %vm45_vm0, %v39_v27 }
  0x1f   :  { %1084 = vmatpush3.bf16.msra.mxu0 %v1083_v51 }
  0x20   :  { %988 = vmatmul.mubr.msk.f32.gmra.mrb[10].mxu1 %vm45_vm0, %v40_v30  ;;  %1085 = vmatprep.subr.bf16.mxu0 %v1107_v38 }
  0x21   :  { %1011 = vmatprep.mubr.msk.f32.mxu1 %vm1108_vm3, %v1109_v41  ;;  %v1371_v41 = vld [vmem:[%s1585_s5] ss:$0 sm:$0xff] }
  0x23   :  { %1087 = vmatpush3.bf16.msra.mxu0 %v1086_v54 }
  0x24   :  { %1088 = vmatprep.subr.bf16.mxu0 %v1107_v38 }
  0x27   :  { %1090 = vmatpush3.bf16.msra.mxu0 %v1089_v57 }
  0x28   :  { %1091 = vmatprep.subr.bf16.mxu0 %v1107_v38 }
  0x2b   :  { %1093 = vmatpush3.bf16.msra.mxu0 %v1092_v60  ;;  %v1599_v60 = vmov 0 }
  0x2c   :  { %1094 = vmatprep.subr.bf16.mxu0 %v1107_v38 }
  0x2f   :  { %1096 = vmatpush3.bf16.msra.mxu0 %v1095_v63  ;;  %v1601_v63 = vmov 0 }
  0x30   :  { %1097 = vmatprep.subr.bf16.mxu0 %v1107_v38 }
  0x85   :  { %v1322_v0 = vpop.permute.xlu1 %438 }
  0x86   :  { %v1324_v1 = vpop.permute.xlu0 %393  ;;  %vm452_vm6 = vcmp.lt.s32.totalorder %v1341_v21, %v1322_v0  ;;  %vm453_vm9 = vcmp.lt.s32.totalorder %v1347_v32, %v1322_v0 }
  0x87   :  { %vm407_vm7 = vcmp.ge.s32.totalorder %v1341_v21, %v1324_v1  ;;  %vm408_vm10 = vcmp.ge.s32.totalorder %v1347_v32, %v1324_v1 }
  0x88   :  { %vm1382_vm15 = vmand %vm407_vm7, %vm452_vm6 }
  0x89   :  { %v1328_v3 = vpop.permute.xlu1 %441  ;;  %vm1398_vm3 = vmand %vm408_vm10, %vm453_vm9 }
  0x8a   :  { %v1330_v5 = vpop.permute.xlu0 %396  ;;  %vm454_vm11 = vcmp.lt.s32.totalorder %v1341_v21, %v1328_v3  ;;  %vm455_vm12 = vcmp.lt.s32.totalorder %v1347_v32, %v1328_v3 }
  0x8b   :  { %vm409_vm13 = vcmp.ge.s32.totalorder %v1341_v21, %v1330_v5  ;;  %vm410_vm14 = vcmp.ge.s32.totalorder %v1347_v32, %v1330_v5 }
  0x8c   :  { %vm1411_vm6 = vmand %vm409_vm13, %vm454_vm11 }
  0x8d   :  { %v1334_v13 = vpop.permute.xlu1 %444 }
  0x8e   :  { %v1336_v14 = vpop.permute.xlu0 %399  ;;  %vm456_vm0 = vcmp.lt.s32.totalorder %v1341_v21, %v1334_v13 }
  0x8f   :  { %vm411_vm1 = vcmp.ge.s32.totalorder %v1341_v21, %v1336_v14 }
  0x90   :  { %vm1429_vm11 = vmand %vm411_vm1, %vm456_vm0 }
  0x91   :  { %v1344_v28 = vpop.permute.xlu1 %447 }
  0x92   :  { %v1349_v33 = vpop.permute.xlu0 %402  ;;  %vm458_vm7 = vcmp.lt.s32.totalorder %v1341_v21, %v1344_v28  ;;  %vm459_vm13 = vcmp.lt.s32.totalorder %v1347_v32, %v1344_v28 }
  0x93   :  { %vm413_vm9 = vcmp.ge.s32.totalorder %v1341_v21, %v1349_v33 }
  0x94   :  { %vm1447_vm0 = vmand %vm413_vm9, %vm458_vm7  ;;  %vm1606_vm7 = vcmp.ge.s32.totalorder %v1347_v32, %v1336_v14 }
  0x95   :  { %v451_v44 = vpop.permute.xlu1 %450  ;;  %v1602_v63 = vsel %vm1447_vm0, 4294967295, %v1601_v63 }
  0x96   :  { %vm460_vm2 = vcmp.lt.s32.totalorder %v1341_v21, %v451_v44  ;;  %v406_v46 = vpop.permute.xlu0 %405  ;;  %vm461_vm1 = vcmp.lt.s32.totalorder %v1347_v32, %v451_v44 }
  0xdf   :  { %v1326_v2 = vpop.f32.mrb[0].mxu1 }
  0xe0   :  { %v130_v4 = vpop.f32.mrb[1].mxu1 }
  0xe2   :  { %v1000_v6 = vpop.f32.mrb[0].mxu0 }
  0xe3   :  { %v1332_v7 = vpop.f32.mrb[2].mxu1  ;;  %v490_v8 = vrot.slane %v1000_v6, 2  ;;  %v328_v9 = vpop.f32.mrb[1].mxu0 }
  0xe4   :  { %v140_v10 = vpop.f32.mrb[3].mxu1  ;;  %v489_v11 = vrot.slane %v328_v9, 2 }
  0xe6   :  { %v491_v15 = vsel %vm488_vm4, %v489_v11, %v490_v8  ;;  %v1003_v16 = vpop.f32.mrb[2].mxu0 }
  0xe7   :  { %v972_v17 = vpop.f32.mrb[4].mxu1  ;;  %v338_v18 = vpop.f32.mrb[3].mxu0  ;;  %v600_v22 = vrot.slane %v1003_v16, 2 }
  0xe8   :  { %v1339_v19 = vpop.f32.mrb[5].mxu1  ;;  %v492_v20 = vrot.slane %v338_v18, 2 }
  0xea   :  { %v493_v23 = vsel %vm488_vm4, %v490_v8, %v492_v20  ;;  %v1006_v24 = vpop.f32.mrb[4].mxu0 }
  0xeb   :  { %v983_v25 = vpop.f32.mrb[6].mxu1  ;;  %v603_v26 = vrot.slane %v1006_v24, 2  ;;  %v348_v27 = vpop.f32.mrb[5].mxu0 }
  0xec   :  { %v477_v29 = vrot.slane %v983_v25, 1  ;;  %v228_v30 = vpop.f32.mrb[7].mxu1  ;;  %v601_v31 = vrot.slane %v348_v27, 2 }
  0xed   :  { %v476_v34 = vrot.slane %v228_v30, 1 }
  0xee   :  { %v1352_v35 = vsel %vm488_vm4, %v600_v22, %v601_v31  ;;  %v1355_v36 = vsel %vm488_vm4, %v601_v31, %v603_v26  ;;  %vm415_vm4 = vcmp.ge.s32.totalorder %v1341_v21, %v406_v46 }
  0xef   :  { %v478_v37 = vsel %vm475_vm5, %v476_v34, %v477_v29  ;;  %v986_v38 = vpop.f32.mrb[8].mxu1  ;;  %vm1441_vm8 = vmand %vm415_vm4, %vm460_vm2  ;;  %vm416_vm2 = vcmp.ge.s32.totalorder %v1347_v32, %v406_v46  ;;  %vm1605_vm4 = vcmp.lt.s32.totalorder %v1347_v32, %v1334_v13 }
  0xf0   :  { %v483_v39 = vadd.f32 %v478_v37, %v130_v4  ;;  %v238_v40 = vpop.f32.mrb[9].mxu1  ;;  %v588_v55 = vrot.slane %v986_v38, 1  ;;  %v1600_v60 = vsel %vm1441_vm8, 4294967295, %v1599_v60 }
  0xf1   :  { %v479_v42 = vrot.slane %v238_v40, 1 }
  0xf2   :  { %v496_v43 = vadd.f32 %v491_v15, %v483_v39 }
  0xf3   :  { %v480_v47 = vsel %vm475_vm5, %v477_v29, %v479_v42  ;;  %v989_v48 = vpop.f32.mrb[10].mxu1 }
  0xf4   :  { %v504_v50 = vadd.f32 %v1371_v41, %v496_v43  ;;  %v484_v51 = vadd.f32 %v1326_v2, %v480_v47  ;;  %v591_v52 = vrot.slane %v989_v48, 1  ;;  %v248_v53 = vpop.f32.mrb[11].mxu1 }
  0xf5   :  { %v589_v56 = vrot.slane %v248_v53, 1 }
  0xf6   :  { %v506_v58 = vmax.f32 %v504_v50, 0.0  ;;  %v497_v59 = vadd.f32 %v493_v23, %v484_v51 }
  0xf7   :  { %v590_v61 = vsel %vm475_vm5, %v588_v55, %v589_v56  ;;  %v592_v62 = vsel %vm475_vm5, %v589_v56, %v591_v52  ;;  %vm1464_vm5 = vmand %vm410_vm14, %vm455_vm12  ;;  %vm1609_vm14 = vcmask 130048  }
  0xf8   :  { %v516_v0 = vsel %vm1441_vm8, %v506_v58, 0.0  ;;  %v505_v1 = vadd.f32 %v1371_v41, %v497_v59  ;;  %v508_v2 = vsel %vm1382_vm15, %v506_v58, 0.0  ;;  %v510_v4 = vsel %vm1411_vm6, %v506_v58, 0.0  ;;  %vm1480_vm12 = vmand %vm1606_vm7, %vm1605_vm4 }
  0xf9   :  { %v512_v8 = vsel %vm1429_vm11, %v506_v58, 0.0  ;;  %v514_v9 = vsel %vm1447_vm0, %v506_v58, 0.0  ;;  %v555_v5 = vsel %vm1609_vm14, %v516_v0, -inf  ;;  %vm1610_vm9 = vmmov %vm1609_vm14  ;;  %vm1612_vm8 = vcmp.ge.s32.totalorder %v1347_v32, %v1349_v33 }
  0xfa   :  { %v507_v10 = vmax.f32 %v505_v1, 0.0  ;;  %v519_v11 = vsel %vm1610_vm9, %v508_v2, -inf  ;;  %vm1611_vm10 = vmmov %vm1610_vm9  ;;  %v595_v16 = vadd.f32 %v1332_v7, %v590_v61  ;;  %v596_v17 = vadd.f32 %v592_v62, %v1339_v19 }
  0xfb   :  { %v528_v12 = vsel %vm1611_vm10, %v510_v4, -inf  ;;  %vm1493_vm0 = vmand %vm1612_vm8, %vm459_vm13 }
  0xfc   :  { %vm1615_vm4 = vmmov %vm1610_vm9  ;;  %v509_v20 = vsel %vm1398_vm3, %v507_v10, 0.0  ;;  %v511_v21 = vsel %vm1464_vm5, %v507_v10, 0.0  ;;  %v513_v22 = vsel %vm1480_vm12, %v507_v10, 0.0  ;;  %v515_v23 = vsel %vm1493_vm0, %v507_v10, 0.0 }
  0xfd   :  { %v537_v14 = vsel %vm1615_vm4, %v512_v8, -inf  ;;  %vm1616_vm7 = vmmov %vm1615_vm4  ;;  %v607_v32 = vadd.f32 %v1352_v35, %v595_v16  ;;  %v608_v33 = vadd.f32 %v1355_v36, %v596_v17  ;;  %vm575_vm9 = vcmask 1041409  }
  0xfe   :  { %v546_v15 = vsel %vm1616_vm7, %v514_v9, -inf  ;;  %vm1501_vm14 = vmand %vm416_vm2, %vm461_vm1  ;;  %vm579_vm7 = vcmask 1043459  }
  0xff   :  { %v517_v7 = vsel %vm1501_vm14, %v507_v10, 0.0  ;;  %vm1619_vm8 = vmmov %vm1615_vm4  ;;  %v609_v42 = vadd.f32 %v1371_v41, %v607_v32  ;;  %v610_v43 = vadd.f32 %v1371_v41, %v608_v33 }
 0x100   :  { %v520_v19 = vsel %vm1619_vm8, %v509_v20, -inf  ;;  %vm1620_vm10 = vmmov %vm1615_vm4  ;;  %vm581_vm8 = vcmask 1044484  }
 0x101   :  { %v529_v24 = vsel %vm1620_vm10, %v511_v21, -inf  ;;  %vm1621_vm13 = vmmov %vm1615_vm4  ;;  %v521_v26 = vmax.f32 %v519_v11, %v520_v19  ;;  %v611_v35 = vmax.f32 %v609_v42, 0.0  ;;  %v612_v51 = vmax.f32 %v610_v43, 0.0 }
 0x102   :  { %v538_v25 = vsel %vm1621_vm13, %v513_v22, -inf  ;;  %v530_v27 = vmax.f32 %v528_v12, %v529_v24  ;;  %vm1622_vm1 = vmmov %vm1615_vm4  ;;  %vm577_vm4 = vcmask 1042434  }
 0x103   :  { %v539_v28 = vmax.f32 %v537_v14, %v538_v25  ;;  %v547_v29 = vsel %vm1622_vm1, %v515_v23, -inf  ;;  %vm1623_vm2 = vmmov %vm1622_vm1  ;;  %v522_v34 = vrot.slane %v521_v26, 4  ;;  %v613_v58 = vsel %vm1382_vm15, %v611_v35, 0.0 }
 0x104   :  { %v548_v30 = vmax.f32 %v546_v15, %v547_v29  ;;  %v556_v31 = vsel %vm1623_vm2, %v517_v7, -inf  ;;  %v531_v37 = vrot.slane %v530_v27, 4  ;;  %v614_v41 = vsel %vm1398_vm3, %v612_v51, 0.0 }
 0x105   :  { %v540_v38 = vrot.slane %v539_v28, 4  ;;  %v557_v39 = vmax.f32 %v555_v5, %v556_v31  ;;  %v523_v44 = vmax.f32 %v521_v26, %v522_v34  ;;  %v615_v59 = vsel %vm1411_vm6, %v611_v35, 0.0  ;;  %vm1626_vm6 = vmmov %vm1622_vm1 }
 0x106   :  { %v549_v40 = vrot.slane %v548_v30, 4  ;;  %v532_v46 = vmax.f32 %v530_v27, %v531_v37  ;;  %v616_v4 = vsel %vm1464_vm5, %v612_v51, 0.0  ;;  %v617_v8 = vsel %vm1429_vm11, %v611_v35, 0.0  ;;  %vm1627_vm11 = vmmov %vm1622_vm1 }
 0x107   :  { %v541_v47 = vmax.f32 %v539_v28, %v540_v38  ;;  %v558_v48 = vrot.slane %v557_v39, 4  ;;  %v524_v36 = vrot.slane %v523_v44, 2  ;;  %v618_v45 = vsel %vm1480_vm12, %v612_v51, 0.0 }
 0x108   :  { %v550_v50 = vmax.f32 %v548_v30, %v549_v40  ;;  %v533_v52 = vrot.slane %v532_v46, 2  ;;  %vm1624_vm15 = vnez %v1602_v63  ;;  %v620_v12 = vsel %vm1493_vm0, %v612_v51, 0.0  ;;  %vm1628_vm0 = vmmov %vm1622_vm1 }
 0x109   :  { %v542_v53 = vrot.slane %v541_v47, 2  ;;  %v559_v55 = vmax.f32 %v557_v39, %v558_v48  ;;  %v525_v61 = vmax.f32 %v523_v44, %v524_v36  ;;  %v619_v11 = vsel %vm1624_vm15, %v611_v35, 0.0  ;;  %vm1629_vm5 = vmmov %vm1628_vm0 }
 0x10a   :  { %v551_v56 = vrot.slane %v550_v50, 2  ;;  %v534_v62 = vmax.f32 %v532_v46, %v533_v52  ;;  %vm1625_vm3 = vnez %v1600_v60  ;;  %v622_v17 = vsel %vm1501_vm14, %v612_v51, 0.0  ;;  %vm1630_vm12 = vmmov %vm1628_vm0 }
 0x10b   :  { %v543_v0 = vmax.f32 %v541_v47, %v542_v53  ;;  %v560_v1 = vrot.slane %v559_v55, 2  ;;  %v526_v9 = vrot.slane %v525_v61, 1  ;;  %v621_v6 = vsel %vm1625_vm3, %v611_v35, 0.0  ;;  %vm1631_vm10 = vmmov %vm1628_vm0 }
 0x10c   :  { %v552_v2 = vmax.f32 %v550_v50, %v551_v56  ;;  %v535_v49 = vrot.slane %v534_v62, 1  ;;  %v623_v20 = vsel %vm1626_vm6, %v613_v58, -inf  ;;  %v624_v21 = vsel %vm1627_vm11, %v614_v41, -inf  ;;  %vm1632_vm14 = vmmov %vm1628_vm0 }
 0x10d   :  { %v544_v5 = vrot.slane %v543_v0, 1  ;;  %v561_v10 = vmax.f32 %v559_v55, %v560_v1  ;;  %v527_v14 = vmax.f32 %v525_v61, %v526_v9  ;;  %v625_v13 = vmax.f32 %v623_v20, %v624_v21  ;;  %vm1633_vm13 = vmmov %vm1628_vm0  ;;  %v672_v9 = vpop.permute.xlu1 %671  ;;  %v905_v21 = vld [vmem:[%s1587_s9] ss:$0 sm:$0xff] }
 0x10e   :  { %v553_v54 = vrot.slane %v552_v2, 1  ;;  %v536_v57 = vmax.f32 %v534_v62, %v535_v49  ;;  %v632_v23 = vsel %vm1628_vm0, %v615_v59, -inf  ;;  %v633_v7 = vsel %vm1629_vm5, %v616_v4, -inf  ;;  %vm1634_vm1 = vmmov %vm1628_vm0  ;;  %v568_v4 = vpop.permute.xlu0 %567 }
 0x10f   :  { %v545_v15 = vmax.f32 %v543_v0, %v544_v5  ;;  %v562_v16 = vrot.slane %v561_v10, 1  ;;  %v641_v19 = vsel %vm1630_vm12, %v617_v8, -inf  ;;  %v642_v24 = vsel %vm1631_vm10, %v618_v45, -inf  ;;  %vm1635_vm2 = vmmov %vm1628_vm0 }
 0x110   :  { %v554_v3 = vmax.f32 %v552_v2, %v553_v54  ;;  %v576_v22 = vsel %vm575_vm9, %v536_v57, %v527_v14  ;;  %v626_v25 = vrot.slane %v625_v13, 4  ;;  %v634_v26 = vmax.f32 %v632_v23, %v633_v7  ;;  %vm1636_vm6 = vmmov %vm1628_vm0  ;;  %v781_v14 = vld [vmem:[%s1584_s8 + $0x70] sm:$0xff]  ;;  %v782_v57 = vld [vmem:[%s1584_s8 + $0x78] sm:$0xff] }
 0x111   :  { %v563_v63 = vmax.f32 %v561_v10, %v562_v16  ;;  %v578_v60 = vsel %vm577_vm4, %v545_v15, %v576_v22  ;;  %v643_v27 = vmax.f32 %v641_v19, %v642_v24  ;;  %v650_v29 = vsel %vm1632_vm14, %v619_v11, -inf  ;;  %v903_v16 = vld [vmem:[%s1586_s7] ss:$0 sm:$0xff] }
 0x112   :  { %v580_v18 = vsel %vm579_vm7, %v554_v3, %v578_v60  ;;  %v651_v30 = vsel %vm1633_vm13, %v620_v12, -inf  ;;  %v659_v31 = vsel %vm1634_vm1, %v621_v6, -inf  ;;  %v635_v32 = vrot.slane %v634_v26, 4 }
 0x113   :  { %v582_v28 = vsel %vm581_vm8, %v563_v63, %v580_v18  ;;  %v627_v33 = vmax.f32 %v625_v13, %v626_v25  ;;  %v644_v34 = vrot.slane %v643_v27, 4  ;;  %v652_v37 = vmax.f32 %v650_v29, %v651_v30 }
 0x114   :  { %v660_v38 = vsel %vm1635_vm2, %v622_v17, -inf  ;;  %v636_v40 = vmax.f32 %v634_v26, %v635_v32  ;;  %vm569_vm15 = vcmp.eq.s32.totalorder %v568_v4, 1  ;;  %vm673_vm3 = vcmp.eq.s32.totalorder %v672_v9, 1 }
 0x115   :  { %v628_v39 = vrot.slane %v627_v33, 2  ;;  %v645_v42 = vmax.f32 %v643_v27, %v644_v34  ;;  %v661_v43 = vmax.f32 %v659_v31, %v660_v38  ;;  %v653_v44 = vrot.slane %v652_v37, 4 }
 0x116   :  { %v637_v47 = vrot.slane %v636_v40, 2  ;;  %v584_v11 = vsel %vm569_vm15, %v582_v28, 0.0  ;;  %v1098_v15 = vpack.c.bf16 %v782_v57, %v781_v14 }
 0x117   :  { %v629_v46 = vmax.f32 %v627_v33, %v628_v39  ;;  %v646_v48 = vrot.slane %v645_v42, 2  ;;  %v662_v50 = vrot.slane %v661_v43, 4  ;;  %v654_v35 = vmax.f32 %v652_v37, %v653_v44 }
 0x118   :  { %v638_v36 = vmax.f32 %v636_v40, %v637_v47  ;;  %1099 = vmatpush3.bf16.msra.mxu0 %v1098_v15 }
 0x119   :  { %v630_v51 = vrot.slane %v629_v46, 1  ;;  %v647_v52 = vmax.f32 %v645_v42, %v646_v48  ;;  %v663_v53 = vmax.f32 %v661_v43, %v662_v50  ;;  %v655_v55 = vrot.slane %v654_v35, 2 }
 0x11a   :  { %v639_v58 = vrot.slane %v638_v36, 1 }
 0x11b   :  { %v631_v56 = vmax.f32 %v629_v46, %v630_v51  ;;  %v648_v41 = vrot.slane %v647_v52, 1  ;;  %v664_v59 = vrot.slane %v663_v53, 2  ;;  %v656_v61 = vmax.f32 %v654_v35, %v655_v55 }
 0x11c   :  { %v640_v62 = vmax.f32 %v638_v36, %v639_v58 }
 0x11d   :  { %v649_v0 = vmax.f32 %v647_v52, %v648_v41  ;;  %v665_v1 = vmax.f32 %v663_v53, %v664_v59  ;;  %v657_v2 = vrot.slane %v656_v61, 1 }
 0x11e   :  { %v679_v45 = vsel %vm575_vm9, %v640_v62, %v631_v56  ;;  %vm860_vm9 = vcmask 143360  }
 0x11f   :  { %v666_v8 = vrot.slane %v665_v1, 1  ;;  %v658_v49 = vmax.f32 %v656_v61, %v657_v2  ;;  %v680_v5 = vsel %vm577_vm4, %v649_v0, %v679_v45 }
 0x121   :  { %v667_v10 = vmax.f32 %v665_v1, %v666_v8  ;;  %v681_v54 = vsel %vm579_vm7, %v658_v49, %v680_v5 }
 0x123   :  { %v682_v12 = vsel %vm581_vm8, %v667_v10, %v681_v54 }
 0x124   :  { %v684_v6 = vsel %vm673_vm3, %v682_v12, %v584_v11 }
 0x125   :  { %1012 = vmatmul.mubr.msk.f32.vlgmr.msra.gmra.mrb[12].mxu1 %vm1636_vm6, %v684_v6 }
 0x1f8   :  { %v763_v3 = vpop.f32.mrb[12].mxu1 }
 0x1f9   :  { %v764_v17 = vadd.f32 %v903_v16, %v763_v3  ;;  %v1013_v20 = vpop.f32.mrb[13].mxu1 }
 0x1fb   :  { %1047 = vmatmul.mubr.f32.vlgmr.msra.gmra.mrb[6].mxu0 %v764_v17 }
 0x2ce   :  { %v856_v63 = vpop.f32.mrb[6].mxu0 }
 0x2cf   :  { %v857_v22 = vadd.f32 %v905_v21, %v856_v63  ;;  %v1048_v13 = vpop.f32.mrb[7].mxu0 }
 0x2d1   :  { %861 = vst.msk [vmem:[%s1588_s10] sm:$0x1f] %vm860_vm9, %v857_v22 }

</bundles_post_ra>
